<compile_context>
chip_gen: v7x
topology: tpu7x:2x2x1
jax: 0.10.0
libtpu: 0.0.40
codegen_flags: <defaults>
</compile_context>

<pallas_src>
import jax
import jax.numpy as jnp
from jax.experimental import pallas as pl
from jax.experimental.pallas import tpu as pltpu


def _cutmix_ce_kernel(lam_ref, logits_ref, ta_ref, tb_ref, out_ref):
    # logits_ref: (TILE_B, C) in the model's native dtype; cast to f32 in vregs.
    x = logits_ref[...].astype(jnp.float32)
    tb_rows, c = x.shape

    # numerically stable logsumexp per row
    m = jnp.max(x, axis=-1, keepdims=True)                                   # (TB, 1)
    lse = m + jnp.log(jnp.sum(jnp.exp(x - m), axis=-1, keepdims=True))       # (TB, 1)

    # fused one-hot gather:
    #   weight = lam*(col == ta) + (1-lam)*(col == tb)
    # -> one select-chain + a single cross-lane reduction (instead of two).
    col = jax.lax.broadcasted_iota(jnp.int32, (tb_rows, c), 1)
    lam = lam_ref[0]
    w = (jnp.where(col == ta_ref[...], lam, 0.0)
         + jnp.where(col == tb_ref[...], 1.0 - lam, 0.0))                    # (TB, C)
    picked = jnp.sum(w * x, axis=-1, keepdims=True)                          # (TB, 1)

    # per-sample loss; the mean over the real batch is done in the wrapper.
    out_ref[...] = lse - picked


def _pick_tile_b(b, c, itemsize):
    # ~1 MiB of logits per input block (double-buffered by the pipeline);
    # never bigger than the (8-rounded) batch, always a multiple of 8, <= 512.
    budget = 1 << 20
    tb = budget // max(1, c * itemsize)
    tb = min(tb, 512, ((b + 7) // 8) * 8)
    tb = max(8, (tb // 8) * 8)
    return int(tb)


def _cutmix_ce_pallas(logits, target_a, target_b, lam, *, tile_b=None):
    b, c = logits.shape
    itemsize = jnp.dtype(logits.dtype).itemsize
    tb = _pick_tile_b(b, c, itemsize) if tile_b is None else int(tile_b)
    nb = pl.cdiv(b, tb)
    bp = nb * tb

    ta_col = target_a.astype(jnp.int32).reshape(b, 1)
    tb_col = target_b.astype(jnp.int32).reshape(b, 1)
    if bp != b:
        pad = bp - b
        logits = jnp.pad(logits, ((0, pad), (0, 0)))      # padded rows are ignored below
        ta_col = jnp.pad(ta_col, ((0, pad), (0, 0)))
        tb_col = jnp.pad(tb_col, ((0, pad), (0, 0)))
    lam_arr = jnp.asarray(lam, jnp.float32).reshape(1,)

    # VMEM budget: 2x double-buffered native-dtype input block + f32 temporaries
    # (x, col, w, exp) with headroom; stays well under v7x's 64 MiB.
    in_blk = tb * c * itemsize
    f32_blk = tb * c * 4
    vmem_limit = int(min(48 << 20, max(16 << 20, 3 * in_blk + 6 * f32_blk + (4 << 20))))

    per_sample = pl.pallas_call(
        _cutmix_ce_kernel,
        out_shape=jax.ShapeDtypeStruct((bp, 1), jnp.float32),
        grid_spec=pltpu.PrefetchScalarGridSpec(
            num_scalar_prefetch=0,
            grid=(nb,),
            in_specs=[
                pl.BlockSpec(memory_space=pltpu.SMEM),        # lam (1,) scalar
                pl.BlockSpec((tb, c), lambda i: (i, 0)),      # logits tile (native dtype)
                pl.BlockSpec((tb, 1), lambda i: (i, 0)),      # target_a tile
                pl.BlockSpec((tb, 1), lambda i: (i, 0)),      # target_b tile
            ],
            out_specs=pl.BlockSpec((tb, 1), lambda i: (i, 0)),
        ),
        compiler_params=pltpu.CompilerParams(
            dimension_semantics=("parallel",),
            vmem_limit_bytes=vmem_limit,
        ),
    )(lam_arr, logits, ta_col, tb_col)

    # mean over the real batch rows only (padded tail rows ignored).
    return jnp.sum(per_sample[:b, 0]) / b


class CutMixLoss:
    """JAX/Pallas port of dlib CutMixLoss forward (CrossEntropyLoss core)."""

    def __init__(self, lambda_=1.0, start_epoch=None, end_epoch=None):
        self.lambda_ = float(lambda_)
        if end_epoch == -1:
            end_epoch = None
        self.start_epoch = start_epoch
        self.end_epoch = end_epoch
        self.c_epoch = 0

    def is_on(self, _epoch=None):
        c_epoch = self.c_epoch if _epoch is None else _epoch
        if self.start_epoch is None and self.end_epoch is None:
            return True
        l = [c_epoch, self.start_epoch, self.end_epoch]
        if all(isinstance(z, int) for z in l):
            return self.start_epoch <= c_epoch <= self.end_epoch
        if self.start_epoch is None and isinstance(self.end_epoch, int):
            return c_epoch <= self.end_epoch
        if isinstance(self.start_epoch, int) and self.end_epoch is None:
            return c_epoch >= self.start_epoch
        return False

    def __call__(self, epoch=0, cl_logits=None, glabel=None, cutmix_holder=None):
        self.c_epoch = epoch
        if not self.is_on():
            # matches torch self._zero (shape (1,)); loss path returns a 0-d scalar,
            # same shape inconsistency as the original module.
            return jnp.zeros((1,), jnp.float32)
        if cutmix_holder is None:
            # CE(logits, glabel) * lambda_   (ta = tb = glabel, lam = 1)
            ce = _cutmix_ce_pallas(cl_logits, glabel, glabel, 1.0)
            return ce * self.lambda_
        assert isinstance(cutmix_holder, list) and len(cutmix_holder) == 3
        target_a, target_b, lam = cutmix_holder
        return _cutmix_ce_pallas(cl_logits, target_a, target_b, lam)


def _ce_ref(logits, targets):
    # pure-JAX reference: torch.nn.CrossEntropyLoss(reduction='mean')
    logits = logits.astype(jnp.float32)
    lse = jax.scipy.special.logsumexp(logits, axis=-1)
    picked = jnp.take_along_axis(logits, targets[:, None], axis=-1)[:, 0]
    return jnp.mean(lse - picked)


if __name__ == "__main__":
    key = jax.random.PRNGKey(0)
    k1, k2, k3, k4, k5, k6 = jax.random.split(key, 6)

    B, C = 8, 16  # small synthetic shapes: batch=8, num_classes=16
    cl_logits = jax.random.normal(k1, (B, C), dtype=jnp.float32)
    glabel = jax.random.randint(k2, (B,), 0, C, dtype=jnp.int32)
    target_b = jax.random.randint(k3, (B,), 0, C, dtype=jnp.int32)
    lam = 0.7

    loss_mod = CutMixLoss(lambda_=1.0)

    # case 1: no cutmix_holder  ->  CE(logits, glabel) * lambda_
    out_plain = jax.block_until_ready(
        loss_mod(epoch=0, cl_logits=cl_logits, glabel=glabel, cutmix_holder=None))
    ref_plain = _ce_ref(cl_logits, glabel) * loss_mod.lambda_

    # case 2: cutmix_holder = [target_a, target_b, lam]
    out_cutmix = jax.block_until_ready(
        loss_mod(epoch=0, cl_logits=cl_logits, glabel=glabel,
                 cutmix_holder=[glabel, target_b, lam]))
    ref_cutmix = _ce_ref(cl_logits, glabel) * lam + _ce_ref(cl_logits, target_b) * (1.0 - lam)

    assert jnp.allclose(out_plain, ref_plain, atol=1e-5, rtol=1e-5), (out_plain, ref_plain)
    assert jnp.allclose(out_cutmix, ref_cutmix, atol=1e-5, rtol=1e-5), (out_cutmix, ref_cutmix)

    # case 3: multi-block grid + batch padding + bf16 logits kept native into the kernel
    B2, C2 = 20, 40
    lg2 = jax.random.normal(k4, (B2, C2), dtype=jnp.float32).astype(jnp.bfloat16)
    ta2 = jax.random.randint(k5, (B2,), 0, C2, dtype=jnp.int32)
    tb2 = jax.random.randint(k6, (B2,), 0, C2, dtype=jnp.int32)
    out2 = jax.block_until_ready(_cutmix_ce_pallas(lg2, ta2, tb2, 0.3, tile_b=8))
    lg2_f32 = lg2.astype(jnp.float32)
    ref2 = _ce_ref(lg2_f32, ta2) * 0.3 + _ce_ref(lg2_f32, tb2) * 0.7
    assert jnp.allclose(out2, ref2, atol=1e-4, rtol=1e-4), (out2, ref2)

    print("KERNEL_OK")
</pallas_src>

<mosaic_0001>
module attributes {stable_mosaic.version = 11 : i64} {
  func.func @_cutmix_ce_kernel(%arg0: i32, %arg1: memref<1xf32, #tpu.memory_space<smem>>, %arg2: memref<8x16xf32, #tpu.memory_space<vmem>>, %arg3: memref<8x1xi32, #tpu.memory_space<vmem>>, %arg4: memref<8x1xi32, #tpu.memory_space<vmem>>, %arg5: memref<8x1xf32, #tpu.memory_space<vmem>>) attributes {dimension_semantics = [#tpu.dimension_semantics<parallel>], iteration_bounds = array<i64: 1>, scalar_prefetch = 0 : i64, scratch_operands = 0 : i64, tpu.core_type = #tpu.core_type<tc>, window_params = [{transform_indices = @transform_0, window_bounds = array<i64: 1>}, {transform_indices = @transform_1, window_bounds = array<i64: 8, 16>}, {transform_indices = @transform_2, window_bounds = array<i64: 8, 1>}, {transform_indices = @transform_3, window_bounds = array<i64: 8, 1>}, {transform_indices = @transform_4, window_bounds = array<i64: 8, 1>}]} {
    %c0 = arith.constant 0 : index
    %c0_0 = arith.constant 0 : index
    %0 = vector.load %arg2[%c0, %c0_0] : memref<8x16xf32, #tpu.memory_space<vmem>>, vector<8x16xf32>
    %cst = arith.constant dense<0xFF800000> : vector<8xf32>
    %1 = vector.multi_reduction <maximumf>, %0, %cst [1] : vector<8x16xf32> to vector<8xf32>
    %2 = vector.shape_cast %1 : vector<8xf32> to vector<8x1xf32>
    %3 = vector.broadcast %2 : vector<8x1xf32> to vector<8x16xf32>
    %4 = arith.subf %0, %3 : vector<8x16xf32>
    %5 = math.exp %4 : vector<8x16xf32>
    %cst_1 = arith.constant dense<0.000000e+00> : vector<8xf32>
    %6 = vector.multi_reduction <add>, %5, %cst_1 [1] : vector<8x16xf32> to vector<8xf32>
    %7 = vector.shape_cast %6 : vector<8xf32> to vector<8x1xf32>
    %8 = math.log %7 : vector<8x1xf32>
    %9 = arith.addf %2, %8 : vector<8x1xf32>
    %10 = tpu.iota {dimensions = array<i32: 1>} : vector<8x16xi32>
    %c0_2 = arith.constant 0 : index
    %11 = memref.load %arg1[%c0_2] : memref<1xf32, #tpu.memory_space<smem>>
    %c0_3 = arith.constant 0 : index
    %c0_4 = arith.constant 0 : index
    %12 = vector.load %arg3[%c0_3, %c0_4] : memref<8x1xi32, #tpu.memory_space<vmem>>, vector<8x1xi32>
    %13 = vector.broadcast %12 : vector<8x1xi32> to vector<8x16xi32>
    %14 = arith.cmpi eq, %10, %13 : vector<8x16xi32>
    %cst_5 = arith.constant 0.000000e+00 : f32
    %15 = vector.broadcast %11 : f32 to vector<8x16xf32>
    %16 = vector.broadcast %cst_5 : f32 to vector<8x16xf32>
    %17 = arith.select %14, %15, %16 : vector<8x16xi1>, vector<8x16xf32>
    %c0_6 = arith.constant 0 : index
    %c0_7 = arith.constant 0 : index
    %18 = vector.load %arg4[%c0_6, %c0_7] : memref<8x1xi32, #tpu.memory_space<vmem>>, vector<8x1xi32>
    %19 = vector.broadcast %18 : vector<8x1xi32> to vector<8x16xi32>
    %20 = arith.cmpi eq, %10, %19 : vector<8x16xi32>
    %cst_8 = arith.constant 1.000000e+00 : f32
    %21 = arith.subf %cst_8, %11 : f32
    %cst_9 = arith.constant 0.000000e+00 : f32
    %22 = vector.broadcast %21 : f32 to vector<8x16xf32>
    %23 = vector.broadcast %cst_9 : f32 to vector<8x16xf32>
    %24 = arith.select %20, %22, %23 : vector<8x16xi1>, vector<8x16xf32>
    %25 = arith.addf %17, %24 : vector<8x16xf32>
    %26 = arith.mulf %25, %0 : vector<8x16xf32>
    %cst_10 = arith.constant dense<0.000000e+00> : vector<8xf32>
    %27 = vector.multi_reduction <add>, %26, %cst_10 [1] : vector<8x16xf32> to vector<8xf32>
    %28 = vector.shape_cast %27 : vector<8xf32> to vector<8x1xf32>
    %29 = arith.subf %9, %28 : vector<8x1xf32>
    %c0_11 = arith.constant 0 : index
    %c0_12 = arith.constant 0 : index
    %30 = vector.load %arg5[%c0_11, %c0_12] : memref<8x1xf32, #tpu.memory_space<vmem>>, vector<8x1xf32>
    tpu.vector_store %arg5[%c0_11, %c0_12], %29 {strides = array<i32>} : memref<8x1xf32, #tpu.memory_space<vmem>>, vector<8x1xf32>,
    return
  }
  func.func @transform_0(%arg0: i32) -> i32 {
    %c0_i32 = arith.constant 0 : i32
    %c0_i32_0 = arith.constant 0 : i32
    return %c0_i32 : i32
  }
  func.func @transform_1(%arg0: i32) -> (i32, i32) {
    %c0_i32 = arith.constant 0 : i32
    %c0_i32_0 = arith.constant 0 : i32
    return %arg0, %c0_i32 : i32, i32
  }
  func.func @transform_2(%arg0: i32) -> (i32, i32) {
    %c0_i32 = arith.constant 0 : i32
    %c0_i32_0 = arith.constant 0 : i32
    return %arg0, %c0_i32 : i32, i32
  }
  func.func @transform_3(%arg0: i32) -> (i32, i32) {
    %c0_i32 = arith.constant 0 : i32
    %c0_i32_0 = arith.constant 0 : i32
    return %arg0, %c0_i32 : i32, i32
  }
  func.func @transform_4(%arg0: i32) -> (i32, i32) {
    %c0_i32 = arith.constant 0 : i32
    %c0_i32_0 = arith.constant 0 : i32
    return %arg0, %c0_i32 : i32, i32
  }
}

</mosaic_0001>

<bundles_post_ra>
// kernel: tpu_custom_call.1
= control target key start
LH: loop header
LB: loop body
LE: loop exit
PB: predicated region body
PF: predicated region fallthrough
CT: control target
= control target key end

     0   :  { %vm19_vm0 = vcmask 130048   ;;  %v69_v1 = vmov 0   ;;  %v32_v5 = vlaneseq  ;;  %vm56_vm3 = vcmask 7168   ;;  %s116_s1 = inlined_call_operand.vmem [shape: f32[8,16], index: 1, kind: input, shape index: {}]   ;;  %s117_s3 = inlined_call_operand.vmem [shape: s32[8,1], index: 3, kind: input, shape index: {}]   ;;  %s118_s2 = inlined_call_operand.vmem [shape: s32[8,1], index: 2, kind: input, shape index: {}]   ;;  %s119_s0 = inlined_call_operand.<no memory space> [shape: f32[1], index: 0, kind: input, shape index: {}]   ;;  %s120_s4 = inlined_call_operand.vmem [shape: f32[8,1], index: 4, kind: output, shape index: {}]  }
   0x1   :  { %v18_v0 = vld [vmem:[%s116_s1] sm:$0xff]  ;;  %64 = vset.pattern.permute.xlu1 %v69_v1  ;;  %63 = vset.pattern.permute.xlu0 %v69_v1  ;;  %s47_s22 = ssub.f32 1.0, %s119_s0  ;;  %v40_v12 = vstv %s119_s0 }
   0x2   :  { %v42_v2 = vld [vmem:[%s117_s3] sm:$0xff]  ;;  %v20_v3 = vsel %vm19_vm0, %v18_v0, -inf  ;;  %v33_v8 = vand.u32 127, %v32_v5 }
   0x3   :  { %44 = vperm.xlu1 %64, %v42_v2   ;;  %21 = vmax.xlane.f32.xlu0 %v20_v3  ;;  %v35_v4 = vld [vmem:[%s118_s2] sm:$0xff]  ;;  %v48_v11 = vstv %s47_s22 }
  0x19   :  { %37 = vperm.xlu0 %63, %v35_v4  }
  0x82   :  { %v45_v9 = vpop.permute.xlu1 %44 }
  0x83   :  { %vm46_vm1 = vcmp.eq.s32.totalorder %v33_v8, %v45_v9 }
  0x84   :  { %v49_v13 = vsel %vm46_vm1, %v48_v11, 0.0 }
  0x90   :  { %v22_v6 = vpop.xlane.xlu0 %21 }
  0x91   :  { %v23_v7 = vsub.f32 %v18_v0, %v22_v6 }
  0x93   :  { %v24_v10 = vmul.f32 1.442695, %v23_v7 }
  0x95   :  { %65 = vpow2.f32 %v24_v10 }
  0x98   :  { %v38_v14 = vpop.permute.xlu0 %37 }
  0x99   :  { %vm39_vm2 = vcmp.eq.s32.totalorder %v33_v8, %v38_v14 }
  0x9a   :  { %v41_v15 = vsel %vm39_vm2, %v40_v12, 0.0 }
  0x9b   :  { %v50_v16 = vadd.f32 %v49_v13, %v41_v15 }
  0x9d   :  { %v51_v17 = vmul.f32 %v50_v16, %v18_v0 }
  0x9f   :  { %v66_v18 = vpop.eup %65  ;;  %v52_v20 = vsel %vm19_vm0, %v51_v17, 0.0 }
  0xa0   :  { %v26_v19 = vsel %vm19_vm0, %v66_v18, 0.0 }
  0xa1   :  { %27 = vadd.xlane.f32.xlu1 %v26_v19 }
  0xa5   :  { %53 = vadd.xlane.f32.xlu1 %v52_v20 }
 0x12e   :  { %v28_v21 = vpop.xlane.xlu1 %27 }
 0x12f   :  { %67 = vlog2.f32 %v28_v21 }
 0x132   :  { %v54_v24 = vpop.xlane.xlu1 %53 }
 0x139   :  { %v68_v22 = vpop.eup %67 }
 0x13a   :  { %v30_v23 = vmul.f32 0.6931472, %v68_v22 }
 0x13c   :  { %v31_v25 = vadd.f32 %v30_v23, %v22_v6 }
 0x13e   :  { %v55_v26 = vsub.f32 %v31_v25, %v54_v24 }
 0x140   :  { %57 = vst.msk [vmem:[%s120_s4] sm:$0xff] %vm56_vm3, %v55_v26 }

</bundles_post_ra>
